<compile_context>
chip_gen: v7x
topology: tpu7x:2x2x1
jax: 0.10.0
libtpu: 0.0.40
codegen_flags: <defaults>
</compile_context>

<pallas_src>
import jax
import jax.numpy as jnp
from jax.experimental import pallas as pl
from jax.experimental.pallas import tpu as pltpu

_MAX_DMAS = 4                     # max concurrent chunk DMAs
_MIN_BYTES_PER_DMA = 1 << 20      # only split the copy when chunks are >= 1 MiB


def _round_up(x, m):
    return ((x + m - 1) // m) * m


def _sublane_rows(dtype):
    # Native sublane packing: 8 rows for 32-bit, 16 for bf16/f16, 32 for int8/fp8.
    return 8 * (4 // jnp.dtype(dtype).itemsize)


def _chunk_bounds(rows, dim, dtype, min_bytes_per_dma):
    """Static (start, size) row-ranges for the chunked prefix copy."""
    itemsize = jnp.dtype(dtype).itemsize
    total_bytes = rows * dim * itemsize
    n = int(max(1, min(_MAX_DMAS, total_bytes // max(1, min_bytes_per_dma))))
    chunk = _round_up(-(-rows // n), _sublane_rows(dtype))
    bounds = []
    start = 0
    while start < rows:
        size = min(chunk, rows - start)
        bounds.append((start, size))
        start += size
    return tuple(bounds)


def _make_prefix_copy_kernel(bounds):
    """Kernel: issue one HBM->HBM DMA per chunk, then wait on all of them."""

    def kernel(src_ref, out_ref, sems):
        copies = []
        for c, (start, size) in enumerate(bounds):
            cp = pltpu.make_async_copy(
                src_ref.at[pl.ds(start, size)],
                out_ref.at[pl.ds(start, size)],
                sems.at[c],
            )
            cp.start()
            copies.append(cp)
        for cp in copies:
            cp.wait()

    return kernel


def absolute_positional_embedding(emb_table, seq_len, *,
                                  min_bytes_per_dma=_MIN_BYTES_PER_DMA):
    """Pallas kernel computing emb_table[arange(seq_len)] -> (seq_len, dim)."""
    max_seq_len, dim = emb_table.shape
    assert 0 <= seq_len <= max_seq_len, "seq_len must not exceed max_seq_len"
    if seq_len == 0:
        return jnp.zeros((0, dim), emb_table.dtype)

    itemsize = jnp.dtype(emb_table.dtype).itemsize
    bounds = _chunk_bounds(seq_len, dim, emb_table.dtype, min_bytes_per_dma)

    return pl.pallas_call(
        _make_prefix_copy_kernel(bounds),
        out_shape=jax.ShapeDtypeStruct((seq_len, dim), emb_table.dtype),
        in_specs=[pl.BlockSpec(memory_space=pl.ANY)],    # leave table in HBM
        out_specs=pl.BlockSpec(memory_space=pl.ANY),     # write output via DMA
        scratch_shapes=[pltpu.SemaphoreType.DMA((len(bounds),))],
        cost_estimate=pl.CostEstimate(
            flops=0,
            transcendentals=0,
            bytes_accessed=2 * seq_len * dim * itemsize),
    )(emb_table)


class AbsolutePositionalEmbedding:
    """JAX/Pallas port of the PyTorch module."""

    def __init__(self, dim, max_seq_len, key):
        # nn.Embedding default init: weight ~ N(0, 1), shape (max_seq_len, dim)
        self.weight = jax.random.normal(key, (max_seq_len, dim), jnp.float32)

    def __call__(self, x):
        return absolute_positional_embedding(self.weight, x.shape[1])


if __name__ == "__main__":
    key = jax.random.PRNGKey(0)
    k1, k2, k3, kx = jax.random.split(key, 4)

    # Case 1: main config (dim=32, max_seq_len=64, batch=2, seq=8).
    module = AbsolutePositionalEmbedding(32, 64, k1)
    x = jax.random.normal(kx, (2, 8, 32), jnp.float32)
    out = jax.block_until_ready(module(x))
    assert out.shape == (8, 32)
    assert out.dtype == jnp.float32
    assert jnp.array_equal(out, module.weight[:8]), "mismatch vs reference lookup"

    # Case 2: odd / unaligned sizes (dim=12, seq == max_seq_len == 10).
    module2 = AbsolutePositionalEmbedding(12, 10, k2)
    x2 = jnp.zeros((2, 10, 12), jnp.float32)
    out2 = jax.block_until_ready(module2(x2))
    assert out2.shape == (10, 12)
    assert jnp.array_equal(out2, module2.weight[:10]), "odd-size mismatch"

    # Case 3: exercise the multi-chunk (several in-flight DMAs) path at small
    # shape by lowering the per-DMA byte threshold.
    module3 = AbsolutePositionalEmbedding(128, 64, k3)
    out3 = absolute_positional_embedding(module3.weight, 48,
                                         min_bytes_per_dma=4096)
    out3 = jax.block_until_ready(out3)
    assert out3.shape == (48, 128)
    assert jnp.array_equal(out3, module3.weight[:48]), "chunked-copy mismatch"

    print("KERNEL_OK")
</pallas_src>

<mosaic_0001>
module attributes {stable_mosaic.version = 11 : i64} {
  func.func @kernel(%arg0: memref<64x32xf32, #tpu.memory_space<any>>, %arg1: memref<8x32xf32, #tpu.memory_space<any>>, %arg2: memref<1x!tpu.dma_semaphore, #tpu.memory_space<semaphore_mem>>) attributes {dimension_semantics = [], scalar_prefetch = 0 : i64, scratch_operands = 1 : i64, tpu.core_type = #tpu.core_type<tc>} {
    %c0_i32 = arith.constant 0 : i32
    %c0_i32_0 = arith.constant 0 : i32
    %c0_i32_1 = arith.constant 0 : i32
    %0 = tpu.memref_slice %arg0[%c0_i32_0, %c0_i32_1] : memref<64x32xf32, #tpu.memory_space<any>> -> memref<8x32xf32, #tpu.memory_space<any>>
    %c0_i32_2 = arith.constant 0 : i32
    %c0_i32_3 = arith.constant 0 : i32
    %1 = tpu.memref_slice %arg1[%c0_i32_2, %c0_i32_3] : memref<8x32xf32, #tpu.memory_space<any>> -> memref<8x32xf32, #tpu.memory_space<any>>
    %2 = tpu.memref_slice %arg2[%c0_i32] : memref<1x!tpu.dma_semaphore, #tpu.memory_space<semaphore_mem>> -> memref<1x!tpu.dma_semaphore, #tpu.memory_space<semaphore_mem>>
    %3 = tpu.memref_squeeze %2 : memref<1x!tpu.dma_semaphore, #tpu.memory_space<semaphore_mem>> -> memref<!tpu.dma_semaphore, #tpu.memory_space<semaphore_mem>>
    tpu.enqueue_dma source(%0 : memref<8x32xf32, #tpu.memory_space<any>>) target(%1 : memref<8x32xf32, #tpu.memory_space<any>>) target_semaphore(%3 : memref<!tpu.dma_semaphore, #tpu.memory_space<semaphore_mem>>)
    %c0_i32_4 = arith.constant 0 : i32
    %c0_i32_5 = arith.constant 0 : i32
    %c0_i32_6 = arith.constant 0 : i32
    %4 = tpu.memref_slice %arg0[%c0_i32_5, %c0_i32_6] : memref<64x32xf32, #tpu.memory_space<any>> -> memref<8x32xf32, #tpu.memory_space<any>>
    %c0_i32_7 = arith.constant 0 : i32
    %c0_i32_8 = arith.constant 0 : i32
    %5 = tpu.memref_slice %arg1[%c0_i32_7, %c0_i32_8] : memref<8x32xf32, #tpu.memory_space<any>> -> memref<8x32xf32, #tpu.memory_space<any>>
    %6 = tpu.memref_slice %arg2[%c0_i32_4] : memref<1x!tpu.dma_semaphore, #tpu.memory_space<semaphore_mem>> -> memref<1x!tpu.dma_semaphore, #tpu.memory_space<semaphore_mem>>
    %7 = tpu.memref_squeeze %6 : memref<1x!tpu.dma_semaphore, #tpu.memory_space<semaphore_mem>> -> memref<!tpu.dma_semaphore, #tpu.memory_space<semaphore_mem>>
    tpu.wait_dma2 semaphore(%7 : memref<!tpu.dma_semaphore, #tpu.memory_space<semaphore_mem>>) src(%4 : memref<8x32xf32, #tpu.memory_space<any>>) dst(%5 : memref<8x32xf32, #tpu.memory_space<any>>)
    return
  }
}

</mosaic_0001>

<bundles_post_ra>
// kernel: tpu_custom_call.1
= control target key start
LH: loop header
LB: loop body
LE: loop exit
PB: predicated region body
PF: predicated region fallthrough
CT: control target
= control target key end

     0   :  { %s76_s0 = inlined_call_operand.vmem [shape: f32[64,32], index: 0, kind: input, shape index: {}]   ;;  %s77_s1 = inlined_call_operand.hbm [shape: f32[8,32], index: 1, kind: output, shape index: {}]  }
   0x1   :  { %s13_s8 = sshll.u32 %s76_s0, 4  ;;  %s14_s8 = int_to_ptr.vmem [resolvable:$true] %s13_s8 }
   0x2   :  { %s27_s9 = scalar_lea.vmem %s14_s8, 128  ;;  %s31_s10 = scalar_lea.vmem %s14_s8, 1024 }
   0x3   :  { %p28_p0 = scmp.ne.s32.totalorder %s14_s8, %s27_s9  ;;  %p32_p1 = scmp.lt.s32.totalorder %s14_s8, %s14_s8 }
   0x4   :  { %p33_p2 = scmp.lt.s32.totalorder %s31_s10, %s27_s9 }
   0x6   :  { %p34_p3 = por %p33_p2, %p32_p1 }
   0x8   :  { %p35_p4 = pnand %p34_p3, %p28_p0 }
   0xa   :  { %38 = shalt.err (!%p35_p4)  }
   0xb   :  { %s39_s13 = scalar_lea.hbm %s77_s1, 128 }
   0xc   :  { %p40_p5 = scmp.ne.s32.totalorder %s77_s1, %s39_s13  ;;  %p43_p6 = scmp.lt.u32.totalorder %s39_s13, %s77_s1 }
   0xe   :  { %p45_p7 = pnand %p43_p6, %p40_p5 }
  0x10   :  { %48 = shalt.err (!%p45_p7)  }
  0x11   :  { %16 = dma.vmem_to_hbm [thread:$0]  %s14_s8, 128, %s77_s1, [#allocation2] }
  0x12   :  { %49 = dma.done.wait [#allocation2], 128 }
  0x13   :  { %50 = vsyncadd [#allocation2], 4294967168 }
  0x14   :  { %20 = vsyncmov [#allocation2] }
  0x17   :  { %s21_s19 = vpop.sfrf %20 }
  0x18   :  { %p26_p8 = scmp.ne.s32.totalorder %s21_s19, 0 }
  0x1a   :  { %25 = shalt.err (%p26_p8)  }

</bundles_post_ra>
